<compile_context>
chip_gen: v7x
topology: tpu7x:2x2x1
jax: 0.10.0
libtpu: 0.0.40
codegen_flags: <defaults>
</compile_context>

<pallas_src>
import jax
import jax.numpy as jnp
import numpy as np
from jax import lax
from jax.experimental import pallas as pl
from jax.experimental.pallas import tpu as pltpu

_MiB = 1024 * 1024
_VMEM_FOOTPRINT_BUDGET = 40 * _MiB   # cap for the double-buffered pipeline footprint
_VMEM_LIMIT_CAP = 48 * _MiB          # never request more (v7x has 64 MiB / TC)
_TARGET_STEP_INPUT_BYTES = 4 * _MiB  # amortize ~0.35 us per-grid-step overhead


def _round_up(x: int, m: int) -> int:
    return ((x + m - 1) // m) * m


def _inner_product_linear_kernel(u_ref, i_ref, w_ref, b_ref, o_ref):
    # VPU elementwise product on the (tb, Dl) block.
    x = u_ref[...] * i_ref[...]
    # MXU: x @ W.T expressed by contracting dim 1 of x with dim 1 of W
    # (no wrapper-side transpose of W).  Accumulate in f32.
    y = lax.dot_general(
        x, w_ref[...],
        dimension_numbers=(((1,), (1,)), ((), ())),
        preferred_element_type=jnp.float32)                    # (tb, tn) f32
    o_ref[...] = (y + b_ref[...].astype(jnp.float32)).astype(o_ref.dtype)


def inner_product_linear_forward(users_embed, items_embed, weight, bias,
                                 *, compute_dtype=None):
    """users_embed, items_embed: [B, D]; weight: [D, D] (PyTorch nn.Linear
    convention, out = x @ weight.T + bias); bias: [D].

    compute_dtype: optional dtype (e.g. jnp.bfloat16) for u / i / W inside the
    kernel; accumulation stays f32 and the output keeps the input dtype.
    """
    B, D = users_embed.shape
    assert items_embed.shape == (B, D)
    assert weight.shape == (D, D)
    assert bias.shape == (D,)

    out_dtype = users_embed.dtype

    u, it, w = users_embed, items_embed, weight
    if compute_dtype is not None:
        u = u.astype(compute_dtype)
        it = it.astype(compute_dtype)
        w = w.astype(compute_dtype)

    # ---- lane layout: never pad u / i / output in HBM ------------------------
    if D < 128 and 128 % D == 0 and B % (128 // D) == 0:
        # Lane-pack: (B, D) -> (B//r, r*D) (free row-major view), block-diagonal
        # W' = kron(I_r, W), bias tiled r times.  Fully lane-dense vregs.
        r = 128 // D
        rows, Dl = B // r, r * D
        u_in = u.reshape(rows, Dl)
        i_in = it.reshape(rows, Dl)
        w_in = jnp.kron(jnp.eye(r, dtype=w.dtype), w)          # (Dl, Dl), tiny
        b_in = jnp.tile(bias, r).reshape(1, Dl)
        packed = True
    else:
        # Direct path: block last dim == true D (allowed: equals full array dim).
        rows, Dl = B, D
        u_in, i_in, w_in = u, it, w
        b_in = bias.reshape(1, D)
        packed = False

    in_isz = jnp.dtype(u_in.dtype).itemsize
    w_isz = jnp.dtype(w_in.dtype).itemsize
    b_isz = jnp.dtype(b_in.dtype).itemsize
    out_isz = jnp.dtype(out_dtype).itemsize

    # ---- W tiling: resident (fetched once) if it fits half the VMEM budget ---
    if 2 * Dl * Dl * w_isz <= _VMEM_FOOTPRINT_BUDGET // 2:
        tn = Dl
    else:
        tn = 512 if Dl >= 512 else (256 if Dl >= 256 else 128)
    nn = pl.cdiv(Dl, tn)

    # ---- batch tile from a per-step DMA byte budget ---------------------------
    tb = max(8, (_TARGET_STEP_INPUT_BYTES // (2 * Dl * in_isz)) // 8 * 8)
    tb = min(tb, 4096, _round_up(rows, 8))
    if rows >= 16:
        # Guarantee >= 2 batch tiles so v7x's two TensorCores both get work.
        tb = min(tb, _round_up(pl.cdiv(rows, 2), 8))

    def _footprint(tb_):
        return 2 * (2 * tb_ * Dl * in_isz          # u + i blocks (double-buffered)
                    + tb_ * tn * out_isz           # output block
                    + tn * Dl * w_isz              # W block
                    + 8 * _round_up(tn, 128) * b_isz)   # bias block (tile-padded)

    while tb > 8 and _footprint(tb) > _VMEM_FOOTPRINT_BUDGET:
        tb = max(8, _round_up(tb // 2, 8))
    nb = pl.cdiv(rows, tb)

    vmem_limit = int(min(_VMEM_LIMIT_CAP,
                         max(32 * _MiB, _footprint(tb) + 8 * _MiB)))

    # Scheduler hint with real (unpacked) B, D and per-array itemsizes.
    w_fetches = 1 if nn == 1 else nb
    cost = pl.CostEstimate(
        flops=2 * B * D * D + 2 * B * D,
        transcendentals=0,
        bytes_accessed=(B * D * (2 * in_isz + out_isz)
                        + w_fetches * Dl * Dl * w_isz + Dl * b_isz),
    )

    out = pl.pallas_call(
        _inner_product_linear_kernel,
        out_shape=jax.ShapeDtypeStruct((rows, Dl), out_dtype),
        grid_spec=pltpu.PrefetchScalarGridSpec(
            num_scalar_prefetch=0,
            grid=(nb, nn),
            in_specs=[
                pl.BlockSpec((tb, Dl), lambda i, j: (i, 0)),   # users tile
                pl.BlockSpec((tb, Dl), lambda i, j: (i, 0)),   # items tile
                pl.BlockSpec((tn, Dl), lambda i, j: (j, 0)),   # W rows (out-dim tile)
                pl.BlockSpec((1, tn),  lambda i, j: (0, j)),   # bias tile
            ],
            out_specs=pl.BlockSpec((tb, tn), lambda i, j: (i, j)),
        ),
        compiler_params=pltpu.CompilerParams(
            dimension_semantics=("parallel", "parallel"),
            vmem_limit_bytes=vmem_limit),
        cost_estimate=cost,
    )(u_in, i_in, w_in, b_in)

    if packed:
        out = out.reshape(B, D)   # free row-major view back to (B, D)
    return out


# ---------------------------------------------------------------------------
# Regularizers: tiny parameter-only reductions, not worth a Pallas kernel.
# TODO(synk): keep get_L1_reg / get_L2_reg in plain JAX.
# ---------------------------------------------------------------------------
def get_l1_reg(weight, bias):
    d = weight.shape[0]
    return jnp.sum(jnp.abs(weight)) / (d * d) + jnp.sum(jnp.abs(bias)) / d


def get_l2_reg(weight, bias):
    d = weight.shape[0]
    return jnp.sum(weight * weight) / (d * d) + jnp.sum(bias * bias) / d


# ---------------------------------------------------------------------------
# Deterministic parameter init mirroring the PyTorch module's __init__.
# ---------------------------------------------------------------------------
def _xavier_uniform(key, shape, dtype=jnp.float32):
    fan_in, fan_out = shape[1], shape[0]
    bound = np.sqrt(6.0 / (fan_in + fan_out))
    return jax.random.uniform(key, shape, dtype, minval=-bound, maxval=bound)


def _linear_bias_init(key, fan_in, shape, dtype=jnp.float32):
    bound = 1.0 / np.sqrt(fan_in)
    return jax.random.uniform(key, shape, dtype, minval=-bound, maxval=bound)


if __name__ == "__main__":
    factor_dim = 32
    batch = 8

    key = jax.random.PRNGKey(0)
    k_w, k_b, k_u, k_i = jax.random.split(key, 4)

    weight = _xavier_uniform(k_w, (factor_dim, factor_dim))       # linear_map.weight
    bias = _linear_bias_init(k_b, factor_dim, (factor_dim,))      # linear_map.bias

    users_embed = jax.random.normal(k_u, (batch, factor_dim), jnp.float32)
    items_embed = jax.random.normal(k_i, (batch, factor_dim), jnp.float32)

    # 1) Small batch, lane-packed path, f32 compute (exact PyTorch semantics).
    out = jax.block_until_ready(
        inner_product_linear_forward(users_embed, items_embed, weight, bias))
    ref = (users_embed * items_embed) @ weight.T + bias
    np.testing.assert_allclose(np.asarray(out), np.asarray(ref),
                               rtol=1e-5, atol=1e-5)

    # 2) Multi-tile batch not divisible by tb (exercises partial-block masking).
    B2 = 1000
    k_u2, k_i2 = jax.random.split(k_u)
    u2 = jax.random.normal(k_u2, (B2, factor_dim), jnp.float32)
    i2 = jax.random.normal(k_i2, (B2, factor_dim), jnp.float32)
    out2 = jax.block_until_ready(
        inner_product_linear_forward(u2, i2, weight, bias))
    ref2 = (u2 * i2) @ weight.T + bias
    np.testing.assert_allclose(np.asarray(out2), np.asarray(ref2),
                               rtol=1e-5, atol=1e-5)

    # 3) bf16 compute path (halves HBM input traffic; f32 accumulation).
    out3 = jax.block_until_ready(
        inner_product_linear_forward(u2, i2, weight, bias,
                                     compute_dtype=jnp.bfloat16))
    x_bf = u2.astype(jnp.bfloat16) * i2.astype(jnp.bfloat16)
    ref3 = jnp.dot(x_bf, weight.astype(jnp.bfloat16).T,
                   preferred_element_type=jnp.float32) + bias
    np.testing.assert_allclose(np.asarray(out3), np.asarray(ref3),
                               rtol=2e-3, atol=2e-3)

    # 4) Non-packable D (128 % D != 0) exercises the direct full-D-block path.
    D3, B3 = 24, 10
    k_w3, k_b3, k_u3, k_i3 = jax.random.split(k_b, 4)
    w3 = _xavier_uniform(k_w3, (D3, D3))
    b3 = _linear_bias_init(k_b3, D3, (D3,))
    u3 = jax.random.normal(k_u3, (B3, D3), jnp.float32)
    i3 = jax.random.normal(k_i3, (B3, D3), jnp.float32)
    out4 = jax.block_until_ready(inner_product_linear_forward(u3, i3, w3, b3))
    ref4 = (u3 * i3) @ w3.T + b3
    np.testing.assert_allclose(np.asarray(out4), np.asarray(ref4),
                               rtol=1e-5, atol=1e-5)

    # Regularizers (plain JAX).
    _ = jax.block_until_ready(get_l1_reg(weight, bias))
    _ = jax.block_until_ready(get_l2_reg(weight, bias))

    print("KERNEL_OK")
</pallas_src>

<mosaic_0001>
module attributes {stable_mosaic.version = 11 : i64} {
  func.func @_inner_product_linear_kernel(%arg0: i32, %arg1: i32, %arg2: memref<8x128xf32, #tpu.memory_space<vmem>>, %arg3: memref<8x128xf32, #tpu.memory_space<vmem>>, %arg4: memref<128x128xf32, #tpu.memory_space<vmem>>, %arg5: memref<1x128xf32, #tpu.memory_space<vmem>>, %arg6: memref<8x128xf32, #tpu.memory_space<vmem>>) attributes {dimension_semantics = [#tpu.dimension_semantics<parallel>, #tpu.dimension_semantics<parallel>], iteration_bounds = array<i64: 1, 1>, scalar_prefetch = 0 : i64, scratch_operands = 0 : i64, tpu.core_type = #tpu.core_type<tc>, window_params = [{transform_indices = @transform_0, window_bounds = array<i64: 8, 128>}, {transform_indices = @transform_1, window_bounds = array<i64: 8, 128>}, {transform_indices = @transform_2, window_bounds = array<i64: 128, 128>}, {transform_indices = @transform_3, window_bounds = array<i64: 1, 128>}, {transform_indices = @transform_4, window_bounds = array<i64: 8, 128>}]} {
    %c0 = arith.constant 0 : index
    %c0_0 = arith.constant 0 : index
    %0 = vector.load %arg2[%c0, %c0_0] : memref<8x128xf32, #tpu.memory_space<vmem>>, vector<8x128xf32>
    %c0_1 = arith.constant 0 : index
    %c0_2 = arith.constant 0 : index
    %1 = vector.load %arg3[%c0_1, %c0_2] : memref<8x128xf32, #tpu.memory_space<vmem>>, vector<8x128xf32>
    %2 = arith.mulf %0, %1 : vector<8x128xf32>
    %c0_3 = arith.constant 0 : index
    %c0_4 = arith.constant 0 : index
    %3 = vector.load %arg4[%c0_3, %c0_4] : memref<128x128xf32, #tpu.memory_space<vmem>>, vector<128x128xf32>
    %cst = arith.constant dense<0.000000e+00> : vector<8x128xf32>
    %4 = tpu.matmul %2, %3, %cst {dimension_numbers = #tpu.dot_dimension_numbers<[1], [1], [0], [0], [0, 0, 1, 0], [], []>} : vector<8x128xf32>, vector<128x128xf32>, vector<8x128xf32> -> vector<8x128xf32>
    %c0_5 = arith.constant 0 : index
    %c0_6 = arith.constant 0 : index
    %5 = vector.load %arg5[%c0_5, %c0_6] : memref<1x128xf32, #tpu.memory_space<vmem>>, vector<1x128xf32>
    %6 = vector.broadcast %5 : vector<1x128xf32> to vector<8x128xf32>
    %7 = arith.addf %4, %6 : vector<8x128xf32>
    %c0_7 = arith.constant 0 : index
    %c0_8 = arith.constant 0 : index
    %8 = vector.load %arg6[%c0_7, %c0_8] : memref<8x128xf32, #tpu.memory_space<vmem>>, vector<8x128xf32>
    tpu.vector_store %arg6[%c0_7, %c0_8], %7 {strides = array<i32>} : memref<8x128xf32, #tpu.memory_space<vmem>>, vector<8x128xf32>,
    return
  }
  func.func @transform_0(%arg0: i32, %arg1: i32) -> (i32, i32) {
    %c0_i32 = arith.constant 0 : i32
    %c0_i32_0 = arith.constant 0 : i32
    return %arg0, %c0_i32 : i32, i32
  }
  func.func @transform_1(%arg0: i32, %arg1: i32) -> (i32, i32) {
    %c0_i32 = arith.constant 0 : i32
    %c0_i32_0 = arith.constant 0 : i32
    return %arg0, %c0_i32 : i32, i32
  }
  func.func @transform_2(%arg0: i32, %arg1: i32) -> (i32, i32) {
    %c0_i32 = arith.constant 0 : i32
    %c0_i32_0 = arith.constant 0 : i32
    return %arg1, %c0_i32 : i32, i32
  }
  func.func @transform_3(%arg0: i32, %arg1: i32) -> (i32, i32) {
    %c0_i32 = arith.constant 0 : i32
    %c0_i32_0 = arith.constant 0 : i32
    return %c0_i32, %arg1 : i32, i32
  }
  func.func @transform_4(%arg0: i32, %arg1: i32) -> (i32, i32) {
    %c0_i32 = arith.constant 0 : i32
    return %arg0, %arg1 : i32, i32
  }
}

</mosaic_0001>

<bundles_post_ra>
// kernel: tpu_custom_call.1
= control target key start
LH: loop header
LB: loop body
LE: loop exit
PB: predicated region body
PF: predicated region fallthrough
CT: control target
= control target key end

     0   :  { %9 = vsyncpa [#allocation3], 0  ;;  %s403_s0 = inlined_call_operand.hbm [shape: f32[2,128], index: 0, kind: input, shape index: {}]   ;;  %s404_s1 = inlined_call_operand.vmem [shape: f32[2,128], index: 1, kind: input, shape index: {}]   ;;  %s405_s2 = inlined_call_operand.hbm [shape: f32[128,128], index: 2, kind: input, shape index: {}]   ;;  %s406_s3 = inlined_call_operand.vmem [shape: f32[1,128], index: 3, kind: input, shape index: {}]   ;;  %s407_s4 = inlined_call_operand.hbm [shape: f32[2,128], index: 4, kind: output, shape index: {}]  }
   0x1   :  { %10 = vsyncpa [#allocation6], 0 }
   0x2   :  { %11 = vsyncpa [#allocation4], 0 }
   0x3   :  { %16 = vsyncadd [#allocation3], 96  ;;  %s320_s15 = smov [#allocation2]   ;;  %s248_s19 = scalar_lea.hbm %s403_s0, 32 }
   0x4   :  { %s17_s16 = sshll.u32 %s320_s15, 4  ;;  %p249_p0 = scmp.ne.s32.totalorder %s403_s0, %s248_s19  ;;  %s18_s16 = int_to_ptr.vmem [resolvable:$true] %s17_s16 }
   0x5   :  { %p252_p1 = scmp.lt.u32.totalorder %s248_s19, %s403_s0 }
   0x7   :  { %p254_p2 = pnand %p252_p1, %p249_p0 }
   0x9   :  { %257 = shalt.err (!%p254_p2)
}
   0xa   :  { %s258_s24 = scalar_lea.vmem %s18_s16, 32  ;;  %s262_s25 = scalar_lea.vmem %s18_s16, 128 }
   0xb   :  { %p259_p3 = scmp.ne.s32.totalorder %s18_s16, %s258_s24  ;;  %p263_p4 = scmp.lt.s32.totalorder %s18_s16, %s18_s16 }
   0xc   :  { %p264_p5 = scmp.lt.s32.totalorder %s262_s25, %s258_s24 }
   0xe   :  { %p265_p6 = por %p264_p5, %p263_p4 }
  0x10   :  { %p266_p7 = pnand %p265_p6, %p259_p3 }
  0x12   :  { %269 = shalt.err (!%p266_p7)
}
  0x13   :  { %s321_s26 = smov 32   ;;  %s322_s27 = smov 2  }
  0x14   :  { %23 = dma.hbm_to_vmem [thread:$0]  %s403_s0, 32, %s18_s16, [#allocation3], %s321_s26, %s321_s26, %s322_s27  }
  0x15   :  { %s323_s30 = smov [#allocation5]   ;;  %s270_s8 = scalar_lea.hbm %s405_s2, 2048 }
  0x16   :  { %s31_s5 = sshll.u32 %s323_s30, 4  ;;  %p271_p8 = scmp.ne.s32.totalorder %s405_s2, %s270_s8  ;;  %s32_s5 = int_to_ptr.vmem [resolvable:$true] %s31_s5 }
  0x17   :  { %p274_p9 = scmp.lt.u32.totalorder %s270_s8, %s405_s2 }
  0x19   :  { %p276_p10 = pnand %p274_p9, %p271_p8 }
  0x1b   :  { %279 = shalt.err (!%p276_p10)
}
  0x1c   :  { %s280_s13 = scalar_lea.vmem %s32_s5, 2048  ;;  %p285_p12 = scmp.lt.s32.totalorder %s32_s5, %s32_s5 }
  0x1d   :  { %p281_p11 = scmp.ne.s32.totalorder %s32_s5, %s280_s13  ;;  %p286_p13 = scmp.lt.s32.totalorder %s280_s13, %s280_s13 }
  0x1f   :  { %p287_p0 = por %p286_p13, %p285_p12 }
  0x21   :  { %p288_p1 = pnand %p287_p0, %p281_p11 }
  0x23   :  { %291 = shalt.err (!%p288_p1)
}
  0x24   :  { %s324_s0 = smov 128   ;;  %s325_s14 = smov 8  }
  0x25   :  { %37 = dma.hbm_to_vmem [thread:$0]  %s405_s2, 2048, %s32_s5, [#allocation6], %s324_s0, %s324_s0, %s325_s14  }
  0x26   :  { %314 = dma.done.wait [#allocation3], 128  }
  0x27   :  { %315 = vsyncadd [#allocation3], 4294967168 }
  0x28   :  { %316 = dma.done.wait [#allocation6], 2048  }
  0x29   :  { %317 = vsyncadd [#allocation6], 4294965248  ;;  %v326_v0 = vmov 0.0|0.0   ;;  %vm327_vm0 = vmmov 0   ;;  %v328_v1 = vmov 0.0   ;;  %v49_v2 = vld [vmem:[#allocation5] sm:$0xff] }
  0x2a   :  { %214 = vmatprep.subr.bf16.mxu0 %v326_v0  ;;  %211 = vmatprep.mubr.msk.f32.mxu0 %vm327_vm0, %v328_v1  ;;  %v50_v3 = vld [vmem:[#allocation5 + $0x8] sm:$0xff]  ;;  %v51_v5 = vld [vmem:[#allocation5 + $0x10] sm:$0xff]  ;;  %v52_v6 = vld [vmem:[#allocation5 + $0x18] sm:$0xff] }
  0x2b   :  { %v215_v4 = vpack.c.bf16 %v50_v3, %v49_v2  ;;  %v218_v7 = vpack.c.bf16 %v52_v6, %v51_v5  ;;  %v53_v8 = vld [vmem:[#allocation5 + $0x20] sm:$0xff]  ;;  %v54_v9 = vld [vmem:[#allocation5 + $0x28] sm:$0xff]  ;;  %v55_v11 = vld [vmem:[#allocation5 + $0x30] sm:$0xff] }
  0x2c   :  { %v221_v10 = vpack.c.bf16 %v54_v9, %v53_v8  ;;  %v56_v12 = vld [vmem:[#allocation5 + $0x38] sm:$0xff]  ;;  %v57_v14 = vld [vmem:[#allocation5 + $0x40] sm:$0xff]  ;;  %v58_v15 = vld [vmem:[#allocation5 + $0x48] sm:$0xff] }
  0x2d   :  { %216 = vmatpush3.bf16.xpose.msra.mxu0 %v215_v4  ;;  %v224_v13 = vpack.c.bf16 %v56_v12, %v55_v11  ;;  %v227_v16 = vpack.c.bf16 %v58_v15, %v57_v14  ;;  %v59_v17 = vld [vmem:[#allocation5 + $0x50] sm:$0xff]  ;;  %v60_v18 = vld [vmem:[#allocation5 + $0x58] sm:$0xff]  ;;  %v61_v20 = vld [vmem:[#allocation5 + $0x60] sm:$0xff] }
  0x2e   :  { %217 = vmatprep.subr.bf16.mxu0 %v326_v0  ;;  %v230_v19 = vpack.c.bf16 %v60_v18, %v59_v17  ;;  %v62_v21 = vld [vmem:[#allocation5 + $0x68] sm:$0xff]  ;;  %v63_v23 = vld [vmem:[#allocation5 + $0x70] sm:$0xff]  ;;  %v64_v24 = vld [vmem:[#allocation5 + $0x78] sm:$0xff] }
  0x2f   :  { %v233_v22 = vpack.c.bf16 %v62_v21, %v61_v20  ;;  %v236_v25 = vpack.c.bf16 %v64_v24, %v63_v23  ;;  %v46_v26 = vld [vmem:[#allocation2] sm:$0xff] }
  0x30   :  { %v47_v27 = vld [vmem:[%s404_s1] sm:$0xff] }
  0x31   :  { %v48_v28 = vmul.f32 %v47_v27, %v46_v26  ;;  %v161_v29 = vld [vmem:[%s406_s3] ss:$0 sm:$0xff] }
  0x35   :  { %219 = vmatpush3.bf16.xpose.msra.mxu0 %v218_v7 }
  0x36   :  { %220 = vmatprep.subr.bf16.mxu0 %v326_v0 }
  0x3d   :  { %222 = vmatpush3.bf16.xpose.msra.mxu0 %v221_v10 }
  0x3e   :  { %223 = vmatprep.subr.bf16.mxu0 %v326_v0 }
  0x45   :  { %225 = vmatpush3.bf16.xpose.msra.mxu0 %v224_v13 }
  0x46   :  { %226 = vmatprep.subr.bf16.mxu0 %v326_v0 }
  0x4d   :  { %228 = vmatpush3.bf16.xpose.msra.mxu0 %v227_v16 }
  0x4e   :  { %229 = vmatprep.subr.bf16.mxu0 %v326_v0 }
  0x55   :  { %231 = vmatpush3.bf16.xpose.msra.mxu0 %v230_v19 }
  0x56   :  { %232 = vmatprep.subr.bf16.mxu0 %v326_v0 }
  0x5d   :  { %234 = vmatpush3.bf16.xpose.msra.mxu0 %v233_v22 }
  0x5e   :  { %235 = vmatprep.subr.bf16.mxu0 %v326_v0 }
  0x65   :  { %237 = vmatpush3.bf16.xpose.msra.mxu0 %v236_v25 }
  0x6c   :  { %212 = vmatmul.mubr.f32.vlgmr.msra.gmra.mrb[0].mxu0 %v48_v28 }
 0x13f   :  { %v138_v30 = vpop.f32.mrb[0].mxu0 }
 0x140   :  { %v139_v31 = vadd.f32 %v161_v29, %v138_v30  ;;  %v213_v32 = vpop.f32.mrb[1].mxu0 }
 0x142   :  { %142 = vst [vmem:[#allocation7] sm:$0xff] %v139_v31 }
 0x143   :  { %147 = vsyncadd [#allocation4], 96  ;;  %s329_s20 = smov [#allocation7]  }
 0x144   :  { %s148_s21 = sshll.u32 %s329_s20, 4  ;;  %s149_s21 = int_to_ptr.vmem [resolvable:$true] %s148_s21 }
 0x145   :  { %s292_s22 = scalar_lea.vmem %s149_s21, 32  ;;  %s296_s23 = scalar_lea.vmem %s149_s21, 128 }
 0x146   :  { %p293_p2 = scmp.ne.s32.totalorder %s149_s21, %s292_s22  ;;  %p297_p3 = scmp.lt.s32.totalorder %s149_s21, %s149_s21 }
 0x147   :  { %p298_p4 = scmp.lt.s32.totalorder %s296_s23, %s292_s22 }
 0x149   :  { %p299_p5 = por %p298_p4, %p297_p3 }
 0x14b   :  { %p300_p6 = pnand %p299_p5, %p293_p2 }
 0x14d   :  { %303 = shalt.err (!%p300_p6)
}
 0x14e   :  { %s304_s3 = scalar_lea.hbm %s407_s4, 32 }
 0x14f   :  { %p305_p7 = scmp.ne.s32.totalorder %s407_s4, %s304_s3  ;;  %p308_p8 = scmp.lt.u32.totalorder %s304_s3, %s407_s4 }
 0x151   :  { %p310_p9 = pnand %p308_p8, %p305_p7 }
 0x153   :  { %313 = shalt.err (!%p310_p9)
}
 0x154   :  { %154 = dma.vmem_to_hbm [thread:$0]  %s149_s21, 32, %s407_s4, [#allocation4], %s321_s26, %s321_s26, %s322_s27  }
 0x155   :  { %318 = dma.done.wait [#allocation4], 128  }
 0x156   :  { %319 = vsyncadd [#allocation4], 4294967168 }
 0x157   :  { %158 = vsyncpa [#allocation3], 1 }
 0x158   :  { %159 = vsyncpa [#allocation6], 1 }
 0x159   :  { %160 = vsyncpa [#allocation4], 1 }

</bundles_post_ra>
